<compile_context>
chip_gen: v5e
topology: v5e:2x2
jax: 0.10.0
libtpu: 0.0.40
codegen_flags: <defaults>
</compile_context>

<pallas_src>
import math

import jax
import jax.numpy as jnp
from jax.experimental import pallas as pl
from jax.experimental.pallas import tpu as pltpu

_INV_SQRT_2PI = 1.0 / math.sqrt(2.0 * math.pi)
_MEGACORE_MIN_OUT_BYTES = 4 * 1024 * 1024


def _continuous_softmax_kernel(mu_ref, var_ref, mu_b_ref, var_b_ref, out_ref):
    """One (batch-tile, basis-tile) block of the continuous-softmax forward.

    mu_ref    : [bm, 1]  query means             (precomputed in wrapper)
    var_ref   : [bm, 1]  query variances sigma^2 (precomputed in wrapper)
    mu_b_ref  : [1, bn]  basis means
    var_b_ref : [1, bn]  basis variances sigma_j^2 (precomputed in wrapper)
    out_ref   : [bm, bn] N(mu ; mu_j, sigma_j^2 + sigma^2)
    """
    var = var_ref[...] + var_b_ref[...]                   # [bm, bn] broadcast
    diff = mu_ref[...] - mu_b_ref[...]                    # [bm, bn] broadcast
    rsq = jax.lax.rsqrt(var)                              # EUP op #1
    z = diff * rsq
    pdf = (_INV_SQRT_2PI * rsq) * jnp.exp(-0.5 * z * z)   # EUP op #2 (exp)
    out_ref[...] = pdf.astype(out_ref.dtype)


def _round_up(x, m):
    return (x + m - 1) // m * m


def _vmem_capacity_bytes():
    try:
        return int(pltpu.get_tpu_info().vmem_capacity_bytes)
    except Exception:
        # Conservative fallback (assume v7x: 64 MiB per TensorCore).
        return 64 * 1024 * 1024


def _choose_tiles(B_pad, N_pad, out_itemsize, tile_override=None):
    """Pick (bm, bn, vmem_limit) per TPU generation.

    v5e/v6e (128 MiB VMEM): up to 1024 x 4096 f32 output tiles, 64 MiB scoped.
    v7x     (64 MiB / TC):  up to  512 x 4096 (8 MiB/buffer), 32 MiB scoped.
    """
    vmem_cap = _vmem_capacity_bytes()
    if vmem_cap >= 100 * 1024 * 1024:      # v5e / v6e class parts
        bm_max, bn_max, vmem_limit = 1024, 4096, 64 * 1024 * 1024
    else:                                  # v7x class parts
        bm_max, bn_max, vmem_limit = 512, 4096, 32 * 1024 * 1024

    if tile_override is not None:
        bm, bn = tile_override
        return bm, bn, vmem_limit

    bm = min(bm_max, B_pad)                # multiple of 8   (B_pad is)
    bn = min(bn_max, N_pad)                # multiple of 128 (N_pad is)

    grid_steps = ((B_pad + bm - 1) // bm) * ((N_pad + bn - 1) // bn)
    out_bytes = B_pad * N_pad * out_itemsize
    # Megacore: only force a second grid step when there is enough streaming
    # work for it to pay off on v7x; tiny problems stay at a single step.
    if grid_steps < 2 and out_bytes > _MEGACORE_MIN_OUT_BYTES:
        if B_pad >= 16:
            bm = _round_up((B_pad + 1) // 2, 8)
        elif N_pad >= 256:
            bn = _round_up((N_pad + 1) // 2, 128)
    return bm, bn, vmem_limit


def continuous_softmax(theta, basis_mu, basis_sigma, *, out_dtype=None,
                       tile_override=None):
    """theta: [B, 2]; basis_mu/basis_sigma: [N] (concatenated psi groups).

    Returns [B, N] = E_{N(mu, sigma_sq)}[psi(t)].
    out_dtype: defaults to theta.dtype; pass jnp.bfloat16 to halve output
    writeback bytes when reduced precision is acceptable.
    """
    B, two = theta.shape
    assert two == 2
    N = basis_mu.shape[0]
    f32 = jnp.float32
    out_dtype = out_dtype or theta.dtype

    # Hoisted canonical-param conversion: done once in the wrapper, not per
    # grid step inside the kernel.
    theta_f = theta.astype(f32)
    sigma_sq = -0.5 / theta_f[:, 1:2]          # [B, 1]
    mu = theta_f[:, 0:1] * sigma_sq            # [B, 1]

    # Pad only to hardware granularity (8 sublanes / 128 lanes). Partial edge
    # blocks beyond that are clipped by Pallas via the cdiv grid, so we never
    # round up to whole tiles.
    B_pad = _round_up(B, 8)
    N_pad = _round_up(N, 128)
    if B_pad != B:
        mu = jnp.pad(mu, ((0, B_pad - B), (0, 0)))
        sigma_sq = jnp.pad(sigma_sq, ((0, B_pad - B), (0, 0)),
                           constant_values=1.0)

    # Basis variance precomputed once in the wrapper.
    mu_b = basis_mu.astype(f32)[None, :]
    var_b = (basis_sigma.astype(f32) ** 2)[None, :]
    if N_pad != N:
        mu_b = jnp.pad(mu_b, ((0, 0), (0, N_pad - N)))
        var_b = jnp.pad(var_b, ((0, 0), (0, N_pad - N)), constant_values=1.0)

    bm, bn, vmem_limit = _choose_tiles(
        B_pad, N_pad, jnp.dtype(out_dtype).itemsize, tile_override)
    grid = ((B_pad + bm - 1) // bm, (N_pad + bn - 1) // bn)

    out_padded = pl.pallas_call(
        _continuous_softmax_kernel,
        out_shape=jax.ShapeDtypeStruct((B_pad, N_pad), out_dtype),
        grid=grid,
        in_specs=[
            pl.BlockSpec((bm, 1), lambda i, j: (i, 0)),   # query means
            pl.BlockSpec((bm, 1), lambda i, j: (i, 0)),   # query variances
            pl.BlockSpec((1, bn), lambda i, j: (0, j)),   # basis means
            pl.BlockSpec((1, bn), lambda i, j: (0, j)),   # basis variances
        ],
        out_specs=pl.BlockSpec((bm, bn), lambda i, j: (i, j)),
        compiler_params=pltpu.CompilerParams(
            dimension_semantics=("parallel", "parallel"),
            vmem_limit_bytes=vmem_limit),
    )(mu, sigma_sq, mu_b, var_b)

    return out_padded[:B, :N]


def _reference(theta, basis_mu, basis_sigma):
    """Pure-JAX reference mirroring the PyTorch forward."""
    sigma_sq = (-0.5 / theta[:, 1])[:, None]          # [B, 1]
    mu = theta[:, 0][:, None] * sigma_sq              # [B, 1]
    var = basis_sigma[None, :] ** 2 + sigma_sq        # [B, N]
    diff = mu - basis_mu[None, :]
    return jnp.exp(-0.5 * diff * diff / var) / jnp.sqrt(2.0 * math.pi * var)


def _make_inputs(key, B, basis_mu, basis_sigma):
    k_mu, k_var = jax.random.split(key)
    q_mu = jax.random.uniform(k_mu, (B,), minval=0.0, maxval=1.0,
                              dtype=jnp.float32)
    q_var = jax.random.uniform(k_var, (B,), minval=0.01, maxval=0.25,
                               dtype=jnp.float32)
    theta = jnp.stack([q_mu / q_var, -0.5 / q_var], axis=1)   # [B, 2]
    return theta


if __name__ == "__main__":
    key = jax.random.PRNGKey(0)
    k1, k2 = jax.random.split(key)

    # --- Test 1: demo-sized shapes (single grid step, no padding waste) ---
    B1 = 48
    # psi: two GaussianBasisFunctions groups (96 + 64 = 160 total basis),
    # deliberately NOT a multiple of 128 to exercise the lane padding path.
    mu_g1 = jnp.linspace(0.0, 1.0, 96, dtype=jnp.float32)
    mu_g2 = jnp.linspace(0.0, 1.0, 64, dtype=jnp.float32)
    sig_g1 = jnp.full((96,), 0.05, dtype=jnp.float32)
    sig_g2 = jnp.full((64,), 0.10, dtype=jnp.float32)
    basis_mu1 = jnp.concatenate([mu_g1, mu_g2])        # [160]
    basis_sigma1 = jnp.concatenate([sig_g1, sig_g2])   # [160]
    theta1 = _make_inputs(k1, B1, basis_mu1, basis_sigma1)

    out1 = jax.block_until_ready(continuous_softmax(theta1, basis_mu1,
                                                    basis_sigma1))
    ref1 = _reference(theta1, basis_mu1, basis_sigma1)
    assert out1.shape == (B1, basis_mu1.shape[0])
    assert jnp.allclose(out1, ref1, rtol=2e-4, atol=2e-5), (
        f"max abs err {jnp.max(jnp.abs(out1 - ref1))}")

    # --- Test 2: partial edge blocks via cdiv grid (tile override) ---
    B2, N2 = 20, 300
    basis_mu2 = jnp.linspace(0.0, 1.0, N2, dtype=jnp.float32)
    basis_sigma2 = jnp.full((N2,), 0.07, dtype=jnp.float32)
    theta2 = _make_inputs(k2, B2, basis_mu2, basis_sigma2)

    out2 = jax.block_until_ready(
        continuous_softmax(theta2, basis_mu2, basis_sigma2,
                           tile_override=(16, 256)))   # 2x2 grid, clipped edges
    ref2 = _reference(theta2, basis_mu2, basis_sigma2)
    assert out2.shape == (B2, N2)
    assert jnp.allclose(out2, ref2, rtol=2e-4, atol=2e-5), (
        f"max abs err {jnp.max(jnp.abs(out2 - ref2))}")

    print("KERNEL_OK")
</pallas_src>

<mosaic_0001>
module attributes {stable_mosaic.version = 11 : i64} {
  func.func @_continuous_softmax_kernel(%arg0: i32, %arg1: i32, %arg2: memref<48x1xf32, #tpu.memory_space<vmem>>, %arg3: memref<48x1xf32, #tpu.memory_space<vmem>>, %arg4: memref<1x256xf32, #tpu.memory_space<vmem>>, %arg5: memref<1x256xf32, #tpu.memory_space<vmem>>, %arg6: memref<48x256xf32, #tpu.memory_space<vmem>>) attributes {dimension_semantics = [#tpu.dimension_semantics<parallel>, #tpu.dimension_semantics<parallel>], iteration_bounds = array<i64: 1, 1>, scalar_prefetch = 0 : i64, scratch_operands = 0 : i64, tpu.core_type = #tpu.core_type<tc>, window_params = [{transform_indices = @transform_0, window_bounds = array<i64: 48, 1>}, {transform_indices = @transform_1, window_bounds = array<i64: 48, 1>}, {transform_indices = @transform_2, window_bounds = array<i64: 1, 256>}, {transform_indices = @transform_3, window_bounds = array<i64: 1, 256>}, {transform_indices = @transform_4, window_bounds = array<i64: 48, 256>}]} {
    %c0 = arith.constant 0 : index
    %c0_0 = arith.constant 0 : index
    %0 = vector.load %arg3[%c0, %c0_0] : memref<48x1xf32, #tpu.memory_space<vmem>>, vector<48x1xf32>
    %c0_1 = arith.constant 0 : index
    %c0_2 = arith.constant 0 : index
    %1 = vector.load %arg5[%c0_1, %c0_2] : memref<1x256xf32, #tpu.memory_space<vmem>>, vector<1x256xf32>
    %2 = vector.broadcast %0 : vector<48x1xf32> to vector<48x256xf32>
    %3 = vector.broadcast %1 : vector<1x256xf32> to vector<48x256xf32>
    %4 = arith.addf %2, %3 : vector<48x256xf32>
    %c0_3 = arith.constant 0 : index
    %c0_4 = arith.constant 0 : index
    %5 = vector.load %arg2[%c0_3, %c0_4] : memref<48x1xf32, #tpu.memory_space<vmem>>, vector<48x1xf32>
    %c0_5 = arith.constant 0 : index
    %c0_6 = arith.constant 0 : index
    %6 = vector.load %arg4[%c0_5, %c0_6] : memref<1x256xf32, #tpu.memory_space<vmem>>, vector<1x256xf32>
    %7 = vector.broadcast %5 : vector<48x1xf32> to vector<48x256xf32>
    %8 = vector.broadcast %6 : vector<1x256xf32> to vector<48x256xf32>
    %9 = arith.subf %7, %8 : vector<48x256xf32>
    %10 = math.rsqrt %4 : vector<48x256xf32>
    %11 = arith.mulf %9, %10 : vector<48x256xf32>
    %cst = arith.constant 0.398942292 : f32
    %12 = vector.broadcast %cst : f32 to vector<48x256xf32>
    %13 = arith.mulf %12, %10 : vector<48x256xf32>
    %cst_7 = arith.constant -5.000000e-01 : f32
    %14 = vector.broadcast %cst_7 : f32 to vector<48x256xf32>
    %15 = arith.mulf %14, %11 : vector<48x256xf32>
    %16 = arith.mulf %15, %11 : vector<48x256xf32>
    %17 = math.exp %16 : vector<48x256xf32>
    %18 = arith.mulf %13, %17 : vector<48x256xf32>
    %c0_8 = arith.constant 0 : index
    %c0_9 = arith.constant 0 : index
    %19 = vector.load %arg6[%c0_8, %c0_9] : memref<48x256xf32, #tpu.memory_space<vmem>>, vector<48x256xf32>
    tpu.vector_store %arg6[%c0_8, %c0_9], %18 {strides = array<i32>} : memref<48x256xf32, #tpu.memory_space<vmem>>, vector<48x256xf32>,
    return
  }
  func.func @transform_0(%arg0: i32, %arg1: i32) -> (i32, i32) {
    %c0_i32 = arith.constant 0 : i32
    %c0_i32_0 = arith.constant 0 : i32
    return %arg0, %c0_i32 : i32, i32
  }
  func.func @transform_1(%arg0: i32, %arg1: i32) -> (i32, i32) {
    %c0_i32 = arith.constant 0 : i32
    %c0_i32_0 = arith.constant 0 : i32
    return %arg0, %c0_i32 : i32, i32
  }
  func.func @transform_2(%arg0: i32, %arg1: i32) -> (i32, i32) {
    %c0_i32 = arith.constant 0 : i32
    %c0_i32_0 = arith.constant 0 : i32
    return %c0_i32, %arg1 : i32, i32
  }
  func.func @transform_3(%arg0: i32, %arg1: i32) -> (i32, i32) {
    %c0_i32 = arith.constant 0 : i32
    %c0_i32_0 = arith.constant 0 : i32
    return %c0_i32, %arg1 : i32, i32
  }
  func.func @transform_4(%arg0: i32, %arg1: i32) -> (i32, i32) {
    %c0_i32 = arith.constant 0 : i32
    return %arg0, %arg1 : i32, i32
  }
}

</mosaic_0001>

<bundles_post_ra>
// kernel: tpu_custom_call.1
= control target key start
LH: loop header
LB: loop body
LE: loop exit
PB: predicated region body
PF: predicated region fallthrough
CT: control target
= control target key end

     0   :  { %v441_v3 = vmov 0   ;;  %s707_s0 = inlined_call_operand.vmem [shape: f32[48,1], index: 0, kind: input, shape index: {}]   ;;  %s708_s1 = inlined_call_operand.vmem [shape: f32[48,1], index: 1, kind: input, shape index: {}]   ;;  %s709_s2 = inlined_call_operand.vmem [shape: f32[1,256], index: 2, kind: input, shape index: {}]   ;;  %s710_s3 = inlined_call_operand.vmem [shape: f32[1,256], index: 3, kind: input, shape index: {}]   ;;  %s711_s4 = inlined_call_operand.hbm [shape: f32[48,256], index: 4, kind: output, shape index: {}]  }
   0x1   :  { %v22_v0 = vld [vmem:[%s708_s1 + $0x20] sm:$0xff]  ;;  %v20_v1 = vld [vmem:[%s708_s1 + $0x10] sm:$0xff]  ;;  %366 = vset.pattern.permute.xlu2 %v441_v3  ;;  %365 = vset.pattern.permute.xlu1 %v441_v3 }
   0x2   :  { %v18_v2 = vld [vmem:[%s708_s1] sm:$0xff]  ;;  %364 = vset.pattern.permute.xlu0 %v441_v3  ;;  %47 = vperm.xlu2 %366, %v22_v0  }
   0x3   :  { %37 = vperm.xlu1 %365, %v20_v1   ;;  %27 = vperm.xlu0 %364, %v18_v2  }
   0x4   :  { %9 = vsyncpa [#allocation3], 0  ;;  %v23_v4 = vld [vmem:[%s708_s1 + $0x28] sm:$0xff]  ;;  %v21_v5 = vld [vmem:[%s708_s1 + $0x18] sm:$0xff]  ;;  %s348_s17 = sshll.u32 %s711_s4, 4  ;;  %s443_s18 = smov 256   ;;  %s349_s17 = int_to_ptr.hbm [resolvable:$true] %s348_s17 }
   0x5   :  { %v19_v6 = vld [vmem:[%s708_s1 + $0x8] sm:$0xff]  ;;  %v74_v7 = vld [vmem:[%s707_s0 + $0x10] sm:$0xff]  ;;  %v72_v9 = vld [vmem:[%s707_s0] sm:$0xff]  ;;  %s444_s19 = smov 16  }
   0x6   :  { %v73_v8 = vld [vmem:[%s707_s0 + $0x8] sm:$0xff]  ;;  %v76_v11 = vld [vmem:[%s707_s0 + $0x20] sm:$0xff]  ;;  %v75_v12 = vld [vmem:[%s707_s0 + $0x18] sm:$0xff] }
   0x7   :  { %v77_v10 = vld [vmem:[%s707_s0 + $0x28] sm:$0xff]  ;;  %v24_v13 = vld [vmem:[%s710_s3] sm:$0x3] }
   0x8   :  { %v509_v14 = vperm.slane %v24_v13, 0  ;;  %v511_v15 = vperm.slane %v24_v13, 1  ;;  %v78_v33 = vld [vmem:[%s709_s2] sm:$0x3]  ;;  %s442_s2 = smov [#allocation2]  }
   0x9   :  { %v538_v38 = vperm.slane %v78_v33, 0  ;;  %v540_v42 = vperm.slane %v78_v33, 1  ;;  %s346_s14 = sshll.u32 %s442_s2, 4  ;;  %s347_s14 = int_to_ptr.vmem [resolvable:$true] %s346_s14 }
   0xa   :  { %52 = vperm.xlu2 %366, %v23_v4  }
   0xb   :  { %42 = vperm.xlu1 %365, %v21_v5   ;;  %32 = vperm.xlu0 %364, %v19_v6  }
  0x12   :  { %91 = vperm.xlu2 %366, %v74_v7  }
  0x13   :  { %86 = vperm.xlu1 %365, %v73_v8   ;;  %81 = vperm.xlu0 %364, %v72_v9  }
  0x1a   :  { %106 = vperm.xlu2 %366, %v77_v10  }
  0x1b   :  { %101 = vperm.xlu1 %365, %v76_v11   ;;  %96 = vperm.xlu0 %364, %v75_v12  }
  0x5c   :  { %v48_v16 = vpop.permute.xlu2 %47 }
  0x5d   :  { %v514_v17 = vadd.f32 %v509_v14, %v48_v16  ;;  %v517_v18 = vadd.f32 %v511_v15, %v48_v16 }
  0x5f   :  { %367 = vrsqrt.f32 %v514_v17  ;;  %vm212_vm4 = vweird.f32 %v514_v17  ;;  %vm222_vm5 = vweird.f32 %v517_v18 }
  0x60   :  { %369 = vrsqrt.f32 %v517_v18 }
  0x64   :  { %v53_v19 = vpop.permute.xlu2 %52 }
  0x65   :  { %v70_v20 = vadd.f32 %v509_v14, %v53_v19  ;;  %v71_v21 = vadd.f32 %v511_v15, %v53_v19  ;;  %v523_v22 = vpop.eup %367 }
  0x66   :  { %v525_v23 = vpop.eup %369  ;;  %v207_v24 = vmul.f32 %v523_v22, %v514_v17  ;;  %vm213_vm8 = vweird.f32 %v523_v22 }
  0x67   :  { %371 = vrsqrt.f32 %v70_v20  ;;  %v217_v25 = vmul.f32 %v525_v23, %v517_v18  ;;  %vm232_vm0 = vweird.f32 %v70_v20  ;;  %vm242_vm2 = vweird.f32 %v71_v21  ;;  %vm214_vm10 = vmor %vm212_vm4, %vm213_vm8 }
  0x68   :  { %373 = vrsqrt.f32 %v71_v21  ;;  %v208_v28 = vmul.f32 %v523_v22, %v207_v24  ;;  %vm223_vm9 = vweird.f32 %v525_v23 }
  0x69   :  { %v218_v31 = vmul.f32 %v525_v23, %v217_v25  ;;  %vm224_vm11 = vmor %vm222_vm5, %vm223_vm9 }
  0x6a   :  { %v209_v35 = vmul.f32 0.5, %v208_v28 }
  0x6b   :  { %v219_v39 = vmul.f32 0.5, %v218_v31 }
  0x6c   :  { %v531_v26 = vpop.permute.xlu2 %91  ;;  %v210_v44 = vsub.f32 1.5, %v209_v35 }
  0x6d   :  { %v372_v27 = vpop.eup %371  ;;  %v220_v52 = vsub.f32 1.5, %v219_v39  ;;  %v118_v1 = vsub.f32 %v531_v26, %v538_v38  ;;  %v119_v6 = vsub.f32 %v531_v26, %v540_v42 }
  0x6e   :  { %v374_v29 = vpop.eup %373  ;;  %v227_v30 = vmul.f32 %v372_v27, %v70_v20  ;;  %vm233_vm1 = vweird.f32 %v372_v27  ;;  %v211_v61 = vmul.f32 %v523_v22, %v210_v44 }
  0x6f   :  { %v237_v32 = vmul.f32 %v374_v29, %v71_v21  ;;  %vm243_vm3 = vweird.f32 %v374_v29  ;;  %vm234_vm6 = vmor %vm232_vm0, %vm233_vm1  ;;  %v221_v63 = vmul.f32 %v525_v23, %v220_v52 }
  0x70   :  { %v228_v34 = vmul.f32 %v372_v27, %v227_v30  ;;  %vm244_vm7 = vmor %vm242_vm2, %vm243_vm3  ;;  %v578_v9 = vsel %vm214_vm10, %v523_v22, %v211_v61 }
  0x71   :  { %v238_v36 = vmul.f32 %v374_v29, %v237_v32  ;;  %v585_v16 = vsel %vm224_vm11, %v525_v23, %v221_v63 }
  0x72   :  { %v229_v37 = vmul.f32 0.5, %v228_v34 }
  0x73   :  { %v239_v40 = vmul.f32 0.5, %v238_v36 }
  0x74   :  { %v230_v41 = vsub.f32 1.5, %v229_v37  ;;  %v107_v43 = vpop.permute.xlu2 %106 }
  0x75   :  { %v240_v45 = vsub.f32 1.5, %v239_v40  ;;  %v38_v46 = vpop.permute.xlu1 %37  ;;  %v28_v47 = vpop.permute.xlu0 %27  ;;  %v124_v54 = vsub.f32 %v107_v43, %v538_v38  ;;  %v125_v57 = vsub.f32 %v107_v43, %v540_v42 }
  0x76   :  { %v231_v48 = vmul.f32 %v372_v27, %v230_v41  ;;  %v545_v49 = vadd.f32 %v509_v14, %v38_v46  ;;  %v548_v50 = vadd.f32 %v511_v15, %v38_v46  ;;  %v551_v51 = vadd.f32 %v509_v14, %v28_v47 }
  0x77   :  { %v241_v53 = vmul.f32 %v374_v29, %v240_v45  ;;  %v555_v55 = vadd.f32 %v511_v15, %v28_v47 }
  0x78   :  { %v235_v56 = vsel %vm234_vm6, %v372_v27, %v231_v48  ;;  %375 = vrsqrt.f32 %v545_v49  ;;  %vm172_vm12 = vweird.f32 %v545_v49  ;;  %vm182_vm13 = vweird.f32 %v548_v50 }
  0x79   :  { %v245_v58 = vsel %vm244_vm7, %v374_v29, %v241_v53  ;;  %v256_v59 = vmul.f32 %v235_v56, %v124_v54  ;;  %377 = vrsqrt.f32 %v548_v50  ;;  %v268_v29 = vmul.f32 0.3989423, %v235_v56 }
  0x7a   :  { %v257_v60 = vmul.f32 %v245_v58, %v125_v57  ;;  %379 = vrsqrt.f32 %v551_v51  ;;  %v269_v35 = vmul.f32 0.3989423, %v245_v58  ;;  %vm132_vm0 = vweird.f32 %v551_v51 }
  0x7b   :  { %v280_v62 = vmul.f32 -0.5, %v256_v59  ;;  %381 = vrsqrt.f32 %v555_v55  ;;  %vm142_vm1 = vweird.f32 %v555_v55 }
  0x7c   :  { %v281_v0 = vmul.f32 -0.5, %v257_v60 }
  0x7d   :  { %v292_v2 = vmul.f32 %v280_v62, %v256_v59  ;;  %v43_v3 = vpop.permute.xlu1 %42  ;;  %v33_v4 = vpop.permute.xlu0 %32 }
  0x7e   :  { %v376_v5 = vpop.eup %375  ;;  %v293_v7 = vmul.f32 %v281_v0, %v257_v60  ;;  %v575_v8 = vadd.f32 %v509_v14, %v43_v3  ;;  %v582_v13 = vadd.f32 %v511_v15, %v43_v3  ;;  %v592_v20 = vadd.f32 %v509_v14, %v33_v4 }
  0x7f   :  { %v378_v10 = vpop.eup %377  ;;  %v314_v11 = vmul.f32 1.442695, %v292_v2  ;;  %v167_v12 = vmul.f32 %v376_v5, %v545_v49  ;;  %v599_v23 = vadd.f32 %v511_v15, %v33_v4  ;;  %vm173_vm14 = vweird.f32 %v376_v5 }
  0x80   :  { %v587_v17 = vpop.eup %379  ;;  %v316_v18 = vmul.f32 1.442695, %v293_v7  ;;  %v177_v19 = vmul.f32 %v378_v10, %v548_v50  ;;  %383 = vrsqrt.f32 %v575_v8  ;;  %vm183_vm15 = vweird.f32 %v378_v10  ;;  %vm174_vm2 = vmor %vm172_vm12, %vm173_vm14 }
  0x81   :  { %v594_v21 = vpop.eup %381  ;;  %385 = vpow2.f32 %v314_v11  ;;  %v168_v22 = vmul.f32 %v376_v5, %v167_v12  ;;  %v127_v24 = vmul.f32 %v587_v17, %v551_v51  ;;  %vm133_vm3 = vweird.f32 %v587_v17  ;;  %vm184_vm4 = vmor %vm182_vm13, %vm183_vm15 }
  0x82   :  { %387 = vpow2.f32 %v316_v18  ;;  %v178_v25 = vmul.f32 %v378_v10, %v177_v19  ;;  %v137_v27 = vmul.f32 %v594_v21, %v555_v55  ;;  %vm152_vm5 = vweird.f32 %v592_v20  ;;  %vm134_vm8 = vmor %vm132_vm0, %vm133_vm3 }
  0x83   :  { %v169_v28 = vmul.f32 0.5, %v168_v22  ;;  %v128_v14 = vmul.f32 %v587_v17, %v127_v24  ;;  %389 = vrsqrt.f32 %v582_v13  ;;  %vm162_vm6 = vweird.f32 %v599_v23 }
  0x84   :  { %v179_v30 = vmul.f32 0.5, %v178_v25  ;;  %v138_v31 = vmul.f32 %v594_v21, %v137_v27  ;;  %391 = vrsqrt.f32 %v592_v20  ;;  %vm143_vm7 = vweird.f32 %v594_v21 }
  0x85   :  { %v170_v15 = vsub.f32 1.5, %v169_v28  ;;  %v129_v32 = vmul.f32 0.5, %v128_v14  ;;  %393 = vrsqrt.f32 %v599_v23  ;;  %v610_v33 = vpop.permute.xlu1 %86  ;;  %v82_v56 = vpop.permute.xlu0 %81  ;;  %vm192_vm9 = vweird.f32 %v575_v8  ;;  %vm144_vm12 = vmor %vm142_vm1, %vm143_vm7 }
  0x86   :  { %v612_v34 = vpop.eup %383  ;;  %v180_v36 = vsub.f32 1.5, %v179_v30  ;;  %v139_v41 = vmul.f32 0.5, %v138_v31  ;;  %v116_v47 = vsub.f32 %v610_v33, %v538_v38  ;;  %v117_v49 = vsub.f32 %v610_v33, %v540_v42 }
  0x87   :  { %v386_v37 = vpop.eup %385  ;;  %v171_v39 = vmul.f32 %v376_v5, %v170_v15  ;;  %v130_v40 = vsub.f32 1.5, %v129_v32  ;;  %v187_v43 = vmul.f32 %v612_v34, %v575_v8  ;;  %v114_v4 = vsub.f32 %v82_v56, %v538_v38 }
  0x88   :  { %v388_v44 = vpop.eup %387  ;;  %v328_v45 = vmul.f32 %v386_v37, %v268_v29  ;;  %v181_v46 = vmul.f32 %v378_v10, %v180_v36  ;;  %v140_v63 = vsub.f32 1.5, %v139_v41  ;;  %v115_v51 = vsub.f32 %v82_v56, %v540_v42 }
  0x89   :  { %v624_v48 = vpop.eup %389  ;;  %v329_v52 = vmul.f32 %v388_v44, %v269_v35  ;;  %v175_v53 = vsel %vm174_vm2, %v376_v5, %v171_v39  ;;  %v188_v54 = vmul.f32 %v612_v34, %v187_v43  ;;  %v131_v61 = vmul.f32 %v587_v17, %v130_v40 }
  0x8a   :  { %v392_v57 = vpop.eup %391  ;;  %340 = vst [vmem:[#allocation2 + $0x50] sm:$0xff] %v328_v45  ;;  %v185_v58 = vsel %vm184_vm4, %v378_v10, %v181_v46  ;;  %v250_v59 = vmul.f32 %v175_v53, %v118_v1  ;;  %v197_v60 = vmul.f32 %v624_v48, %v582_v13  ;;  %v262_v5 = vmul.f32 0.3989423, %v175_v53 }
  0x8b   :  { %v394_v50 = vpop.eup %393  ;;  %341 = vst [vmem:[#allocation2 + $0x58] sm:$0xff] %v329_v52  ;;  %v251_v62 = vmul.f32 %v185_v58, %v119_v6  ;;  %v189_v0 = vmul.f32 0.5, %v188_v54  ;;  %v147_v2 = vmul.f32 %v392_v57, %v592_v20  ;;  %vm153_vm10 = vweird.f32 %v392_v57 }
  0x8c   :  { %v274_v3 = vmul.f32 -0.5, %v250_v59  ;;  %v157_v1 = vmul.f32 %v394_v50, %v599_v23  ;;  %v198_v26 = vmul.f32 %v624_v48, %v197_v60  ;;  %v654_v12 = vsel %vm134_vm8, %v587_v17, %v131_v61  ;;  %vm154_vm14 = vmor %vm152_vm5, %vm153_vm10 }
  0x8d   :  { %v275_v7 = vmul.f32 -0.5, %v251_v62  ;;  %v148_v6 = vmul.f32 %v392_v57, %v147_v2  ;;  %v190_v19 = vsub.f32 1.5, %v189_v0  ;;  %v141_v24 = vmul.f32 %v594_v21, %v140_v63  ;;  %v102_v28 = vpop.permute.xlu1 %101  ;;  %v97_v33 = vpop.permute.xlu0 %96 }
  0x8e   :  { %v286_v10 = vmul.f32 %v274_v3, %v250_v59  ;;  %v158_v11 = vmul.f32 %v394_v50, %v157_v1  ;;  %vm163_vm11 = vweird.f32 %v394_v50  ;;  %v246_v30 = vmul.f32 %v654_v12, %v114_v4 }
  0x8f   :  { %v287_v18 = vmul.f32 %v275_v7, %v251_v62  ;;  %v149_v22 = vmul.f32 0.5, %v148_v6  ;;  %v663_v17 = vsel %vm144_vm12, %v594_v21, %v141_v24  ;;  %v199_v31 = vmul.f32 0.5, %v198_v26  ;;  %vm164_vm15 = vmor %vm162_vm6, %vm163_vm11 }
  0x90   :  { %v302_v25 = vmul.f32 1.442695, %v286_v10  ;;  %v159_v27 = vmul.f32 0.5, %v158_v11  ;;  %v247_v32 = vmul.f32 %v663_v17, %v115_v51  ;;  %vm202_vm13 = vweird.f32 %v582_v13 }
  0x91   :  { %v304_v14 = vmul.f32 1.442695, %v287_v18  ;;  %v150_v29 = vsub.f32 1.5, %v149_v22  ;;  %v270_v35 = vmul.f32 -0.5, %v246_v30  ;;  %v122_v36 = vsub.f32 %v102_v28, %v538_v38 }
  0x92   :  { %395 = vpow2.f32 %v302_v25  ;;  %v160_v15 = vsub.f32 1.5, %v159_v27  ;;  %v271_v37 = vmul.f32 -0.5, %v247_v32  ;;  %v123_v39 = vsub.f32 %v102_v28, %v540_v42 }
  0x93   :  { %397 = vpow2.f32 %v304_v14  ;;  %v151_v55 = vmul.f32 %v392_v57, %v150_v29  ;;  %v191_v40 = vmul.f32 %v612_v34, %v190_v19  ;;  %v282_v43 = vmul.f32 %v270_v35, %v246_v30 }
  0x94   :  { %v161_v21 = vmul.f32 %v394_v50, %v160_v15  ;;  %v254_v44 = vmul.f32 %v578_v9, %v122_v36  ;;  %vm193_vm0 = vweird.f32 %v612_v34  ;;  %v263_v45 = vmul.f32 0.3989423, %v185_v58 }
  0x95   :  { %v155_v41 = vsel %vm154_vm14, %v392_v57, %v151_v55  ;;  %v283_v52 = vmul.f32 %v271_v37, %v247_v32  ;;  %v200_v53 = vsub.f32 1.5, %v199_v31  ;;  %v294_v56 = vmul.f32 1.442695, %v282_v43  ;;  %vm194_vm1 = vmor %vm192_vm9, %vm193_vm0 }
  0x96   :  { %v165_v46 = vsel %vm164_vm15, %v394_v50, %v161_v21  ;;  %v248_v20 = vmul.f32 %v155_v41, %v116_v47  ;;  %v255_v23 = vmul.f32 %v585_v16, %v123_v39  ;;  %v278_v60 = vmul.f32 -0.5, %v254_v44 }
  0x97   :  { %v249_v54 = vmul.f32 %v165_v46, %v117_v49  ;;  %v296_v58 = vmul.f32 1.442695, %v283_v52  ;;  %v689_v61 = vsel %vm194_vm1, %v612_v34, %v191_v40  ;;  %399 = vpow2.f32 %v294_v56 }
  0x98   :  { %v396_v57 = vpop.eup %395  ;;  %v272_v59 = vmul.f32 -0.5, %v248_v20  ;;  %v279_v63 = vmul.f32 -0.5, %v255_v23  ;;  %v290_v2 = vmul.f32 %v278_v60, %v254_v44  ;;  %v201_v1 = vmul.f32 %v624_v48, %v200_v53 }
  0x99   :  { %v398_v47 = vpop.eup %397  ;;  %v322_v50 = vmul.f32 %v396_v57, %v262_v5  ;;  %v273_v62 = vmul.f32 -0.5, %v249_v54  ;;  %401 = vpow2.f32 %v296_v58  ;;  %vm203_vm2 = vweird.f32 %v624_v48 }
  0x9a   :  { %v323_v49 = vmul.f32 %v398_v47, %v263_v45  ;;  %v284_v0 = vmul.f32 %v272_v59, %v248_v20  ;;  %v291_v3 = vmul.f32 %v279_v63, %v255_v23  ;;  %v310_v4 = vmul.f32 1.442695, %v290_v2  ;;  %vm204_vm3 = vmor %vm202_vm13, %vm203_vm2 }
  0x9b   :  { %334 = vst [vmem:[#allocation2 + $0x20] sm:$0xff] %v322_v50  ;;  %v285_v8 = vmul.f32 %v273_v62, %v249_v54  ;;  %v120_v5 = vsub.f32 %v97_v33, %v538_v38  ;;  %v121_v7 = vsub.f32 %v97_v33, %v540_v42  ;;  %v205_v10 = vsel %vm204_vm3, %v624_v48, %v201_v1 }
  0x9c   :  { %335 = vst [vmem:[#allocation2 + $0x28] sm:$0xff] %v323_v49  ;;  %v298_v34 = vmul.f32 1.442695, %v284_v0  ;;  %v312_v6 = vmul.f32 1.442695, %v291_v3 }
  0x9d   :  { %v300_v26 = vmul.f32 1.442695, %v285_v8  ;;  %v258_v11 = vmul.f32 0.3989423, %v654_v12  ;;  %v252_v18 = vmul.f32 %v689_v61, %v120_v5  ;;  %v253_v19 = vmul.f32 %v205_v10, %v121_v7  ;;  %v400_v22 = vpop.eup %399 }
  0x9e   :  { %403 = vpow2.f32 %v298_v34  ;;  %v259_v24 = vmul.f32 0.3989423, %v663_v17  ;;  %v260_v28 = vmul.f32 0.3989423, %v155_v41  ;;  %v261_v14 = vmul.f32 0.3989423, %v165_v46 }
  0x9f   :  { %405 = vpow2.f32 %v300_v26  ;;  %v402_v13 = vpop.eup %401  ;;  %v318_v25 = vmul.f32 %v400_v22, %v258_v11  ;;  %v276_v38 = vmul.f32 -0.5, %v252_v18  ;;  %v277_v27 = vmul.f32 -0.5, %v253_v19 }
  0xa0   :  { %407 = vpow2.f32 %v310_v4  ;;  %v319_v42 = vmul.f32 %v402_v13, %v259_v24  ;;  %v266_v17 = vmul.f32 0.3989423, %v578_v9  ;;  %v267_v35 = vmul.f32 0.3989423, %v585_v16 }
  0xa1   :  { %409 = vpow2.f32 %v312_v6  ;;  %330 = vst [vmem:[#allocation2] sm:$0xff] %v318_v25  ;;  %v288_v51 = vmul.f32 %v276_v38, %v252_v18  ;;  %v289_v48 = vmul.f32 %v277_v27, %v253_v19  ;;  %v264_v9 = vmul.f32 0.3989423, %v689_v61 }
  0xa2   :  { %331 = vst [vmem:[#allocation2 + $0x8] sm:$0xff] %v319_v42  ;;  %v265_v40 = vmul.f32 0.3989423, %v205_v10 }
  0xa3   :  { %v306_v29 = vmul.f32 1.442695, %v288_v51  ;;  %v308_v30 = vmul.f32 1.442695, %v289_v48 }
  0xa4   :  { %v404_v12 = vpop.eup %403 }
  0xa5   :  { %v406_v31 = vpop.eup %405  ;;  %v320_v15 = vmul.f32 %v404_v12, %v260_v28  ;;  %411 = vpow2.f32 %v306_v29 }
  0xa6   :  { %v408_v32 = vpop.eup %407  ;;  %v321_v55 = vmul.f32 %v406_v31, %v261_v14  ;;  %413 = vpow2.f32 %v308_v30 }
  0xa7   :  { %v410_v36 = vpop.eup %409  ;;  %332 = vst [vmem:[#allocation2 + $0x10] sm:$0xff] %v320_v15  ;;  %v326_v21 = vmul.f32 %v408_v32, %v266_v17 }
  0xa8   :  { %333 = vst [vmem:[#allocation2 + $0x18] sm:$0xff] %v321_v55  ;;  %v327_v37 = vmul.f32 %v410_v36, %v267_v35 }
  0xa9   :  { %338 = vst [vmem:[#allocation2 + $0x40] sm:$0xff] %v326_v21 }
  0xaa   :  { %339 = vst [vmem:[#allocation2 + $0x48] sm:$0xff] %v327_v37 }
  0xab   :  { %v412_v39 = vpop.eup %411 }
  0xac   :  { %v414_v16 = vpop.eup %413  ;;  %v324_v41 = vmul.f32 %v412_v39, %v264_v9 }
  0xad   :  { %v325_v43 = vmul.f32 %v414_v16, %v265_v40 }
  0xae   :  { %336 = vst [vmem:[#allocation2 + $0x30] sm:$0xff] %v324_v41 }
  0xaf   :  { %337 = vst [vmem:[#allocation2 + $0x38] sm:$0xff] %v325_v43 }
  0xb0   :  { %354 = dma.vmem_to_hbm [thread:$0]  %s347_s14, 1536, %s349_s17, [#allocation3], %s443_s18, %s443_s18, %s444_s19  }
  0xb1   :  { %439 = dma.done.wait [#allocation3], 1536  }
  0xb2   :  { %440 = vsyncadd [#allocation3], 4294965760 }
  0xb3   :  { %359 = vsyncpa [#allocation3], 1 }

</bundles_post_ra>
